<compile_context>
chip_gen: v7x
topology: tpu7x:2x2x1
jax: 0.10.0
libtpu: 0.0.40
codegen_flags: <defaults>
</compile_context>

<pallas_src>
import functools

import jax
import jax.numpy as jnp
import numpy as np
from jax import lax
from jax.experimental import pallas as pl
from jax.experimental.pallas import tpu as pltpu


def _round_up(x: int, m: int) -> int:
    return ((x + m - 1) // m) * m


@functools.lru_cache(maxsize=1)
def _vmem_capacity_bytes() -> int:
    """Per-core VMEM capacity; conservative 64 MiB fallback (v7x-sized) if query fails."""
    try:
        return int(pltpu.get_tpu_info().vmem_capacity_bytes)
    except Exception:
        return 64 * 1024 * 1024


def _linear_kernel(x_ref, w_ref, b_ref, o_ref, acc_ref):
    """One (tm, tn) output tile; K is reduced over grid axis 2.

    x_ref : (tm, tk)   activation tile
    w_ref : (tn, tk)   weight tile in torch (out, in) layout -> contract on axis 1 of both
    b_ref : (1,  tn)   bias tile
    o_ref : (tm, tn)   output tile
    acc_ref: (tm, tn)  f32 VMEM accumulator (persists across the K grid axis)
    """
    k = pl.program_id(2)

    # MXU matmul with f32 accumulation, contracting the K (last) dim of both operands.
    partial = lax.dot_general(
        x_ref[...],
        w_ref[...],
        dimension_numbers=(((1,), (1,)), ((), ())),
        preferred_element_type=jnp.float32,
    )

    @pl.when(k == 0)
    def _():
        # First K step: write directly (saves a full (tm, tn) zero + read-modify-write).
        acc_ref[...] = partial

    @pl.when(k > 0)
    def _():
        acc_ref[...] += partial

    @pl.when(k == pl.num_programs(2) - 1)
    def _():
        # Bias added exactly once, in the epilogue.
        o_ref[...] = (acc_ref[...] + b_ref[...].astype(jnp.float32)).astype(o_ref.dtype)


@functools.partial(jax.jit, static_argnames=("tm", "tn", "tk", "compute_dtype"))
def single_layer_linear(
    x: jax.Array,
    weight: jax.Array,
    bias: jax.Array | None = None,
    *,
    tm: int = 512,
    tn: int = 512,
    tk: int = 1024,
    compute_dtype=None,
) -> jax.Array:
    """y = x @ weight.T + bias  (torch.nn.Linear forward semantics).

    `weight` stays in the torch (out_features, in_features) layout: no wrapper transpose.
    Output dtype follows the original x dtype; set compute_dtype=jnp.bfloat16 to run the
    MXU in bf16 (accumulation is always f32).
    """
    B, K = x.shape
    N, Kw = weight.shape
    assert Kw == K, f"weight in_features {Kw} != x in_features {K}"

    out_dtype = x.dtype
    if compute_dtype is not None:
        x = x.astype(compute_dtype)
        weight = weight.astype(compute_dtype)

    in_isz = jnp.dtype(x.dtype).itemsize
    w_isz = jnp.dtype(weight.dtype).itemsize
    out_isz = jnp.dtype(out_dtype).itemsize
    # Sublane packing: 8 rows/f32, 16 rows/bf16, 32 rows/int8-fp8.
    align_m = {4: 8, 2: 16, 1: 32}.get(in_isz, 8)

    # Aligned problem extents.
    Ma = _round_up(B, align_m)
    Na = _round_up(N, 128)
    Ka = _round_up(K, 128)

    # --- Tile selection ---------------------------------------------------------------
    if B <= 16:
        # GEMV-style fast path: single M block -> W is streamed exactly once; make the
        # K/N tiles large so the kernel is (close to) one streaming pass over the weight.
        tm = Ma
        tn = min(512, Na)
        tk = min(2048, Ka)
    else:
        tm = _round_up(min(tm, Ma), align_m)
        tn = _round_up(min(tn, Na), 128)
        tk = _round_up(min(tk, Ka), 128)

    # Per-chip VMEM budget (leave headroom for Mosaic internal scratch).
    vmem_cap = _vmem_capacity_bytes()
    vmem_budget = min(int(0.75 * vmem_cap), 100 * 1024 * 1024)

    def _vmem_needed(tm_, tn_, tk_):
        # 2x double-buffered inputs (x, W, bias) + 2x output buffers + f32 accumulator.
        return (
            2 * (tm_ * tk_ * in_isz + tn_ * tk_ * w_isz + tn_ * in_isz)
            + 2 * tm_ * tn_ * out_isz
            + tm_ * tn_ * 4
        )

    # Shrink K then N tiles if the requested tiles would blow the per-chip budget.
    while _vmem_needed(tm, tn, tk) > vmem_budget and tk > 128:
        tk = max(128, tk // 2)
    while _vmem_needed(tm, tn, tk) > vmem_budget and tn > 128:
        tn = max(128, tn // 2)

    # v7x-like parts (small per-TC VMEM, 2 TensorCores): make sure at least one
    # 'parallel' grid axis has >= 2 blocks so the second core isn't idle.
    small_vmem_part = vmem_cap <= 64 * 1024 * 1024
    if small_vmem_part and pl.cdiv(Ma, tm) < 2:
        while tn > 128 and pl.cdiv(Na, tn) < 2:
            tn //= 2

    Mp = _round_up(B, tm)
    Np = _round_up(N, tn)
    Kp = _round_up(K, tk)

    # --- Padding (skipped at trace time when already aligned) --------------------------
    xp = x if (Mp == B and Kp == K) else jnp.pad(x, ((0, Mp - B), (0, Kp - K)))
    wp = weight if (Np == N and Kp == K) else jnp.pad(weight, ((0, Np - N), (0, Kp - K)))
    if bias is None:
        bp = jnp.zeros((1, Np), dtype=x.dtype)
    else:
        b2 = bias if Np == N else jnp.pad(bias, (0, Np - N))
        bp = b2.reshape(1, Np)

    grid = (Mp // tm, Np // tn, Kp // tk)

    vmem_needed = _vmem_needed(tm, tn, tk)
    vmem_limit = int(min(max(int(1.5 * vmem_needed), 4 * 1024 * 1024), vmem_budget))

    # Actual HBM traffic: x is re-read once per N tile, W once per M tile.
    cost = pl.CostEstimate(
        flops=2 * Mp * Np * Kp,
        transcendentals=0,
        bytes_accessed=(
            (Np // tn) * Mp * Kp * in_isz
            + (Mp // tm) * Np * Kp * w_isz
            + Np * in_isz
            + Mp * Np * out_isz
        ),
    )

    out_padded = pl.pallas_call(
        _linear_kernel,
        out_shape=jax.ShapeDtypeStruct((Mp, Np), out_dtype),
        grid_spec=pltpu.PrefetchScalarGridSpec(
            num_scalar_prefetch=0,
            grid=grid,
            in_specs=[
                pl.BlockSpec((tm, tk), lambda i, j, k: (i, k)),  # x tile
                pl.BlockSpec((tn, tk), lambda i, j, k: (j, k)),  # W tile, torch (N, K) layout
                pl.BlockSpec((1, tn), lambda i, j, k: (0, j)),   # bias tile
            ],
            out_specs=pl.BlockSpec((tm, tn), lambda i, j, k: (i, j)),
            scratch_shapes=[pltpu.VMEM((tm, tn), jnp.float32)],
        ),
        compiler_params=pltpu.CompilerParams(
            dimension_semantics=("parallel", "parallel", "arbitrary"),
            vmem_limit_bytes=vmem_limit,
        ),
        cost_estimate=cost,
    )(xp, wp, bp)

    return out_padded[:B, :N]


def _reference(x, weight, bias):
    y = x.astype(jnp.float32) @ weight.astype(jnp.float32).T
    if bias is not None:
        y = y + bias.astype(jnp.float32)
    return y


if __name__ == "__main__":
    key = jax.random.PRNGKey(0)

    # ---- Case 1: small shapes matching the module's typical use (GEMV fast path) ----
    batch, in_features, out_features = 8, 32, 64
    kx, kw, kb, key = jax.random.split(key, 4)
    bound = 1.0 / np.sqrt(in_features)
    x = jax.random.normal(kx, (batch, in_features), dtype=jnp.float32)
    weight = jax.random.uniform(
        kw, (out_features, in_features), minval=-bound, maxval=bound, dtype=jnp.float32
    )
    bias = jax.random.uniform(
        kb, (out_features,), minval=-bound, maxval=bound, dtype=jnp.float32
    )
    y = jax.block_until_ready(single_layer_linear(x, weight, bias))
    np.testing.assert_allclose(
        np.asarray(y), np.asarray(_reference(x, weight, bias)), rtol=1e-5, atol=1e-5
    )

    # ---- Case 2: multi-tile grid with non-aligned dims (exercises padding + K loop) ----
    batch2, in2, out2 = 260, 640, 384
    kx2, kw2, kb2, key = jax.random.split(key, 4)
    bound2 = 1.0 / np.sqrt(in2)
    x2 = jax.random.normal(kx2, (batch2, in2), dtype=jnp.float32)
    w2 = jax.random.uniform(kw2, (out2, in2), minval=-bound2, maxval=bound2, dtype=jnp.float32)
    b2 = jax.random.uniform(kb2, (out2,), minval=-bound2, maxval=bound2, dtype=jnp.float32)
    y2 = jax.block_until_ready(single_layer_linear(x2, w2, b2, tm=128, tn=128, tk=256))
    np.testing.assert_allclose(
        np.asarray(y2), np.asarray(_reference(x2, w2, b2)), rtol=1e-4, atol=1e-4
    )

    # ---- Case 3: bf16 compute path, no bias (small batch -> GEMV path, 16-row align) ----
    batch3, in3, out3 = 4, 256, 512
    kx3, kw3, key = jax.random.split(key, 3)
    bound3 = 1.0 / np.sqrt(in3)
    x3 = jax.random.normal(kx3, (batch3, in3), dtype=jnp.float32)
    w3 = jax.random.uniform(kw3, (out3, in3), minval=-bound3, maxval=bound3, dtype=jnp.float32)
    y3 = jax.block_until_ready(
        single_layer_linear(x3, w3, None, compute_dtype=jnp.bfloat16)
    )
    np.testing.assert_allclose(
        np.asarray(y3), np.asarray(_reference(x3, w3, None)), rtol=3e-2, atol=3e-2
    )

    print("KERNEL_OK")
</pallas_src>

<mosaic_0001>
module attributes {stable_mosaic.version = 11 : i64} {
  func.func @_linear_kernel(%arg0: i32, %arg1: i32, %arg2: i32, %arg3: memref<8x128xf32, #tpu.memory_space<vmem>>, %arg4: memref<128x128xf32, #tpu.memory_space<vmem>>, %arg5: memref<1x128xf32, #tpu.memory_space<vmem>>, %arg6: memref<8x128xf32, #tpu.memory_space<vmem>>, %arg7: memref<8x128xf32, #tpu.memory_space<vmem>>) attributes {dimension_semantics = [#tpu.dimension_semantics<parallel>, #tpu.dimension_semantics<parallel>, #tpu.dimension_semantics<arbitrary>], iteration_bounds = array<i64: 1, 1, 1>, scalar_prefetch = 0 : i64, scratch_operands = 1 : i64, tpu.core_type = #tpu.core_type<tc>, window_params = [{transform_indices = @transform_0, window_bounds = array<i64: 8, 128>}, {transform_indices = @transform_1, window_bounds = array<i64: 128, 128>}, {transform_indices = @transform_2, window_bounds = array<i64: 1, 128>}, {transform_indices = @transform_3, window_bounds = array<i64: 8, 128>}]} {
    %c0 = arith.constant 0 : index
    %c0_0 = arith.constant 0 : index
    %0 = vector.load %arg3[%c0, %c0_0] : memref<8x128xf32, #tpu.memory_space<vmem>>, vector<8x128xf32>
    %c0_1 = arith.constant 0 : index
    %c0_2 = arith.constant 0 : index
    %1 = vector.load %arg4[%c0_1, %c0_2] : memref<128x128xf32, #tpu.memory_space<vmem>>, vector<128x128xf32>
    %cst = arith.constant dense<0.000000e+00> : vector<8x128xf32>
    %2 = tpu.matmul %0, %1, %cst {dimension_numbers = #tpu.dot_dimension_numbers<[1], [1], [0], [0], [0, 0, 1, 0], [], []>} : vector<8x128xf32>, vector<128x128xf32>, vector<8x128xf32> -> vector<8x128xf32>
    %c0_i32 = arith.constant 0 : i32
    %3 = arith.cmpi eq, %arg2, %c0_i32 : i32
    %4 = arith.extui %3 : i1 to i32
    %c0_i32_3 = arith.constant 0 : i32
    %5 = arith.cmpi ne, %4, %c0_i32_3 : i32
    scf.if %5 {
      %c0_8 = arith.constant 0 : index
      %c0_9 = arith.constant 0 : index
      %12 = vector.load %arg7[%c0_8, %c0_9] : memref<8x128xf32, #tpu.memory_space<vmem>>, vector<8x128xf32>
      tpu.vector_store %arg7[%c0_8, %c0_9], %2 {strides = array<i32>} : memref<8x128xf32, #tpu.memory_space<vmem>>, vector<8x128xf32>,
    } else {
    }
    %c0_i32_4 = arith.constant 0 : i32
    %6 = arith.cmpi sgt, %arg2, %c0_i32_4 : i32
    %7 = arith.extui %6 : i1 to i32
    %c0_i32_5 = arith.constant 0 : i32
    %8 = arith.cmpi ne, %7, %c0_i32_5 : i32
    scf.if %8 {
      %c0_8 = arith.constant 0 : index
      %c0_9 = arith.constant 0 : index
      %12 = vector.load %arg7[%c0_8, %c0_9] : memref<8x128xf32, #tpu.memory_space<vmem>>, vector<8x128xf32>
      %13 = arith.addf %12, %2 : vector<8x128xf32>
      %c0_10 = arith.constant 0 : index
      %c0_11 = arith.constant 0 : index
      %14 = vector.load %arg7[%c0_10, %c0_11] : memref<8x128xf32, #tpu.memory_space<vmem>>, vector<8x128xf32>
      tpu.vector_store %arg7[%c0_10, %c0_11], %13 {strides = array<i32>} : memref<8x128xf32, #tpu.memory_space<vmem>>, vector<8x128xf32>,
    } else {
    }
    %c0_i32_6 = arith.constant 0 : i32
    %9 = arith.cmpi eq, %arg2, %c0_i32_6 : i32
    %10 = arith.extui %9 : i1 to i32
    %c0_i32_7 = arith.constant 0 : i32
    %11 = arith.cmpi ne, %10, %c0_i32_7 : i32
    scf.if %11 {
      %c0_8 = arith.constant 0 : index
      %c0_9 = arith.constant 0 : index
      %12 = vector.load %arg7[%c0_8, %c0_9] : memref<8x128xf32, #tpu.memory_space<vmem>>, vector<8x128xf32>
      %c0_10 = arith.constant 0 : index
      %c0_11 = arith.constant 0 : index
      %13 = vector.load %arg5[%c0_10, %c0_11] : memref<1x128xf32, #tpu.memory_space<vmem>>, vector<1x128xf32>
      %14 = vector.broadcast %13 : vector<1x128xf32> to vector<8x128xf32>
      %15 = arith.addf %12, %14 : vector<8x128xf32>
      %c0_12 = arith.constant 0 : index
      %c0_13 = arith.constant 0 : index
      %16 = vector.load %arg6[%c0_12, %c0_13] : memref<8x128xf32, #tpu.memory_space<vmem>>, vector<8x128xf32>
      tpu.vector_store %arg6[%c0_12, %c0_13], %15 {strides = array<i32>} : memref<8x128xf32, #tpu.memory_space<vmem>>, vector<8x128xf32>,
    } else {
    }
    return
  }
  func.func @transform_0(%arg0: i32, %arg1: i32, %arg2: i32) -> (i32, i32) {
    %c0_i32 = arith.constant 0 : i32
    return %arg0, %arg2 : i32, i32
  }
  func.func @transform_1(%arg0: i32, %arg1: i32, %arg2: i32) -> (i32, i32) {
    %c0_i32 = arith.constant 0 : i32
    return %arg1, %arg2 : i32, i32
  }
  func.func @transform_2(%arg0: i32, %arg1: i32, %arg2: i32) -> (i32, i32) {
    %c0_i32 = arith.constant 0 : i32
    %c0_i32_0 = arith.constant 0 : i32
    return %c0_i32, %arg1 : i32, i32
  }
  func.func @transform_3(%arg0: i32, %arg1: i32, %arg2: i32) -> (i32, i32) {
    %c0_i32 = arith.constant 0 : i32
    return %arg0, %arg1 : i32, i32
  }
}

</mosaic_0001>

<bundles_post_ra>
// kernel: single_layer_linear.1
= control target key start
LH: loop header
LB: loop body
LE: loop exit
PB: predicated region body
PF: predicated region fallthrough
CT: control target
= control target key end

     0   :  { %v246_v2 = vmov 0.0|0.0   ;;  %vm247_vm0 = vmmov 0   ;;  %v248_v4 = vmov 0.0   ;;  %s336_s0 = inlined_call_operand.vmem [shape: f32[8,128], index: 0, kind: input, shape index: {}]   ;;  %s337_s1 = inlined_call_operand.vmem [shape: f32[128,128], index: 1, kind: input, shape index: {}]   ;;  %s338_s2 = inlined_call_operand.vmem [shape: f32[1,128], index: 2, kind: input, shape index: {}]   ;;  %s339_s3 = inlined_call_operand.hbm [shape: f32[8,128], index: 3, kind: output, shape index: {}]  }
   0x1   :  { %v16_v0 = vld [vmem:[%s337_s1] sm:$0xff]  ;;  %v17_v1 = vld [vmem:[%s337_s1 + $0x8] sm:$0xff]  ;;  %194 = vmatprep.subr.bf16.mxu0 %v246_v2  ;;  %191 = vmatprep.mubr.msk.f32.mxu0 %vm247_vm0, %v248_v4  ;;  %v18_v5 = vld [vmem:[%s337_s1 + $0x10] sm:$0xff] }
   0x2   :  { %v195_v3 = vpack.c.bf16 %v17_v1, %v16_v0  ;;  %v19_v6 = vld [vmem:[%s337_s1 + $0x18] sm:$0xff] }
   0x4   :  { %196 = vmatpush3.bf16.xpose.msra.mxu0 %v195_v3 }
   0x5   :  { %197 = vmatprep.subr.bf16.mxu0 %v246_v2 }
   0x6   :  { %8 = vsyncpa [#allocation4], 0  ;;  %v198_v7 = vpack.c.bf16 %v19_v6, %v18_v5  ;;  %v20_v8 = vld [vmem:[%s337_s1 + $0x20] sm:$0xff]  ;;  %v21_v9 = vld [vmem:[%s337_s1 + $0x28] sm:$0xff]  ;;  %s249_s21 = smov [#allocation3]  }
   0x7   :  { %v201_v10 = vpack.c.bf16 %v21_v9, %v20_v8  ;;  %v22_v11 = vld [vmem:[%s337_s1 + $0x30] sm:$0xff]  ;;  %v23_v12 = vld [vmem:[%s337_s1 + $0x38] sm:$0xff]  ;;  %v24_v14 = vld [vmem:[%s337_s1 + $0x40] sm:$0xff]  ;;  %s133_s22 = sshll.u32 %s249_s21, 4  ;;  %s134_s22 = int_to_ptr.vmem [resolvable:$true] %s133_s22 }
   0x8   :  { %v204_v13 = vpack.c.bf16 %v23_v12, %v22_v11  ;;  %v25_v15 = vld [vmem:[%s337_s1 + $0x48] sm:$0xff]  ;;  %v26_v17 = vld [vmem:[%s337_s1 + $0x50] sm:$0xff]  ;;  %v27_v18 = vld [vmem:[%s337_s1 + $0x58] sm:$0xff]  ;;  %s222_s23 = scalar_lea.vmem %s134_s22, 128  ;;  %p227_p1 = scmp.lt.s32.totalorder %s134_s22, %s134_s22 }
   0x9   :  { %v207_v16 = vpack.c.bf16 %v25_v15, %v24_v14  ;;  %v210_v19 = vpack.c.bf16 %v27_v18, %v26_v17  ;;  %v28_v20 = vld [vmem:[%s337_s1 + $0x60] sm:$0xff]  ;;  %v29_v21 = vld [vmem:[%s337_s1 + $0x68] sm:$0xff]  ;;  %v30_v23 = vld [vmem:[%s337_s1 + $0x70] sm:$0xff]  ;;  %p223_p0 = scmp.ne.s32.totalorder %s134_s22, %s222_s23  ;;  %p228_p2 = scmp.lt.s32.totalorder %s222_s23, %s222_s23 }
   0xa   :  { %v213_v22 = vpack.c.bf16 %v29_v21, %v28_v20  ;;  %v31_v24 = vld [vmem:[%s337_s1 + $0x78] sm:$0xff]  ;;  %v15_v26 = vld [vmem:[%s336_s0] sm:$0xff] }
   0xb   :  { %v216_v25 = vpack.c.bf16 %v31_v24, %v30_v23  ;;  %v141_v27 = vld [vmem:[%s338_s2] ss:$0 sm:$0xff]  ;;  %p229_p3 = por %p228_p2, %p227_p1 }
   0xc   :  { %199 = vmatpush3.bf16.xpose.msra.mxu0 %v198_v7 }
   0xd   :  { %200 = vmatprep.subr.bf16.mxu0 %v246_v2  ;;  %p230_p4 = pnand %p229_p3, %p223_p0 }
  0x14   :  { %202 = vmatpush3.bf16.xpose.msra.mxu0 %v201_v10 }
  0x15   :  { %203 = vmatprep.subr.bf16.mxu0 %v246_v2 }
  0x1c   :  { %205 = vmatpush3.bf16.xpose.msra.mxu0 %v204_v13 }
  0x1d   :  { %206 = vmatprep.subr.bf16.mxu0 %v246_v2 }
  0x24   :  { %208 = vmatpush3.bf16.xpose.msra.mxu0 %v207_v16 }
  0x25   :  { %209 = vmatprep.subr.bf16.mxu0 %v246_v2 }
  0x2c   :  { %211 = vmatpush3.bf16.xpose.msra.mxu0 %v210_v19 }
  0x2d   :  { %212 = vmatprep.subr.bf16.mxu0 %v246_v2 }
  0x34   :  { %214 = vmatpush3.bf16.xpose.msra.mxu0 %v213_v22 }
  0x35   :  { %215 = vmatprep.subr.bf16.mxu0 %v246_v2 }
  0x3c   :  { %217 = vmatpush3.bf16.xpose.msra.mxu0 %v216_v25 }
  0x43   :  { %192 = vmatmul.mubr.f32.vlgmr.msra.gmra.mrb[0].mxu0 %v15_v26 }
 0x116   :  { %v98_v28 = vpop.f32.mrb[0].mxu0 }
 0x117   :  { %v125_v29 = vadd.f32 %v141_v27, %v98_v28  ;;  %v193_v30 = vpop.f32.mrb[1].mxu0 }
 0x119   :  { %126 = vst [vmem:[#allocation3] sm:$0xff] %v125_v29 }
 0x11a   :  { %233 = shalt.err (!%p230_p4)
}
 0x11b   :  { %s234_s24 = scalar_lea.hbm %s339_s3, 128 }
 0x11c   :  { %p235_p5 = scmp.ne.s32.totalorder %s339_s3, %s234_s24  ;;  %p238_p6 = scmp.lt.u32.totalorder %s234_s24, %s339_s3 }
 0x11e   :  { %p240_p7 = pnand %p238_p6, %p235_p5 }
 0x120   :  { %243 = shalt.err (!%p240_p7)
}
 0x121   :  { %136 = dma.vmem_to_hbm [thread:$0]  %s134_s22, 128, %s339_s3, [#allocation4]  }
 0x122   :  { %244 = dma.done.wait [#allocation4], 128  }
 0x123   :  { %245 = vsyncadd [#allocation4], 4294967168 }
 0x124   :  { %140 = vsyncpa [#allocation4], 1 }

</bundles_post_ra>
